<compile_context>
chip_gen: v6e
topology: v6e:2x2x1
jax: 0.10.0
libtpu: 0.0.40
codegen_flags: <defaults>
</compile_context>

<pallas_src>
import functools

import jax
import jax.numpy as jnp
from jax.experimental import pallas as pl
from jax.experimental.pallas import tpu as pltpu


def _round_up(n, m):
    return ((n + m - 1) // m) * m


def _encoder_kernel(n_in, n_hidden, *refs):
    """refs = (act_0..act_{n_in-1},            # packed activation tiles
               w1_0..w1_{n_in-1}, b1,          # split + block-diag first layer
               [w_i, b_i] * (n_hidden-1),      # remaining hidden layers
               w_heads, b_heads,               # fused [means|log_vars] head
               out)                            # (TB, pack*2*latent) output tile

    One grid step processes a packed (TB, 128) batch tile fully on-chip:
    all hidden matmuls + ReLU + the fused head matmul, all lane-dense.
    """
    acts = refs[:n_in]
    p = n_in

    # First layer: sum of per-stream dots (x @ W1x [+ c @ W1c]) + b1, ReLU.
    h = jnp.dot(acts[0][...], refs[p][...], preferred_element_type=jnp.float32)
    for j in range(1, n_in):
        h = h + jnp.dot(acts[j][...], refs[p + j][...],
                        preferred_element_type=jnp.float32)
    p += n_in
    h = jnp.maximum(h + refs[p][...], 0.0)
    p += 1

    # Remaining hidden layers.
    for _ in range(n_hidden - 1):
        w = refs[p][...]
        b = refs[p + 1][...]
        p += 2
        h = jnp.maximum(
            jnp.dot(h, w, preferred_element_type=jnp.float32) + b, 0.0
        )

    # Fused output heads -> single lane-dense output slab.
    w_heads = refs[p][...]
    b_heads = refs[p + 1][...]
    out_ref = refs[p + 2]
    out_ref[...] = (
        jnp.dot(h, w_heads, preferred_element_type=jnp.float32) + b_heads
    ).astype(out_ref.dtype)


def encoder_forward(x, c, mlp_params, head_params, latent_size, tb_packed_max=1024):
    """Full encoder forward as one batch-tiled, lane-packed Pallas call.

    mlp_params : list of (W, b) with W shape [in, out], b shape [out]
                 (first W's `in` == x_features + c_features)
    head_params: (Wm, bm, Wv, bv) with W shape [hidden, latent]
    """
    x = x.astype(jnp.float32)
    B, x_dim = x.shape

    # ---- lane-packing factor: pack `pack` logical rows per 128-lane row ----
    feat = mlp_params[-1][0].shape[1]
    uniform = all(w.shape[1] == feat for w, _ in mlp_params) and all(
        w.shape[0] == feat for w, _ in mlp_params[1:]
    )
    pack = 128 // feat if (uniform and 128 % feat == 0) else 1

    def bd(w):  # block-diagonal: `pack` copies of w along the diagonal
        if pack == 1:
            return w
        return jnp.kron(jnp.eye(pack, dtype=w.dtype), w)

    def bt(b):  # bias tiled `pack` times along lanes
        return jnp.tile(b, pack).reshape(1, -1)

    # Fuse the two output heads into a single matmul / single output slab.
    wm, bm, wv, bv = head_params
    w_heads = jnp.concatenate([wm, wv], axis=1)          # [hidden, 2L]
    b_heads = jnp.concatenate([bm, bv])                  # [2L]
    out_dim = w_heads.shape[1]                           # 2 * latent_size

    # Split first-layer weight so the wrapper concat(x, c) can be dropped.
    w1, b1 = mlp_params[0]
    if c is not None:
        c = c.astype(jnp.float32)
        first_ws = [bd(w1[:x_dim]), bd(w1[x_dim:])]
    else:
        first_ws = [bd(w1)]

    weight_inputs = first_ws + [bt(b1)]
    for w, b in mlp_params[1:]:
        weight_inputs += [bd(w), bt(b)]
    weight_inputs += [bd(w_heads), bt(b_heads)]

    # ---- batch tiling in packed rows (each packed row = `pack` logical rows)
    b_rows = pl.cdiv(B, pack)
    if b_rows <= tb_packed_max:
        # Split into 2 tiles when big enough so v7x's two TCs both get work.
        num_tiles = 2 if b_rows >= 64 else 1
    else:
        num_tiles = pl.cdiv(b_rows, tb_packed_max)
        num_tiles += num_tiles % 2                 # keep grid even for v7x
    tb = _round_up(pl.cdiv(b_rows, num_tiles), 8)  # sublane-aligned tile
    b_rows_pad = num_tiles * tb
    b_pad = b_rows_pad * pack

    def pack_rows(a):
        if a.shape[0] != b_pad:
            a = jnp.pad(a, ((0, b_pad - a.shape[0]), (0, 0)))
        # (b_pad, d) -> (b_pad/pack, pack*d): same HBM bytes, free reshape.
        return a.reshape(b_rows_pad, pack * a.shape[1])

    acts = [pack_rows(x)] + ([pack_rows(c)] if c is not None else [])

    # Activations march along the batch; weights/biases are resident blocks.
    in_specs = [
        pl.BlockSpec((tb, a.shape[1]), lambda i: (i, 0)) for a in acts
    ]
    in_specs += [
        pl.BlockSpec(wgt.shape, lambda i: (0, 0)) for wgt in weight_inputs
    ]

    out_w = pack * out_dim
    out_shape = jax.ShapeDtypeStruct((b_rows_pad, out_w), jnp.float32)
    out_specs = pl.BlockSpec((tb, out_w), lambda i: (i, 0))

    kernel = functools.partial(_encoder_kernel, len(acts), len(mlp_params))

    out = pl.pallas_call(
        kernel,
        grid=(num_tiles,),
        in_specs=in_specs,
        out_specs=out_specs,
        out_shape=out_shape,
        compiler_params=pltpu.CompilerParams(
            dimension_semantics=("parallel",),
            vmem_limit_bytes=32 * 1024 * 1024,  # ample headroom on v5e/v6e/v7x
        ),
    )(*acts, *weight_inputs)

    # Free reshape back to (b_pad, 2*latent); fold the [:B] trim into the split.
    out = out.reshape(b_pad, out_dim)
    return out[:B, :latent_size], out[:B, latent_size:]


def _ref_forward(x, c, mlp_params, head_params):
    """Pure-JAX reference mirroring the PyTorch forward."""
    h = jnp.concatenate([x, c], axis=-1) if c is not None else x
    for w, b in mlp_params:
        h = jnp.maximum(h @ w + b, 0.0)
    wm, bm, wv, bv = head_params
    return h @ wm + bm, h @ wv + bv


def _init_linear(key, in_size, out_size):
    """Deterministic init (PyTorch-style uniform bound), W stored [in, out]."""
    kw, kb = jax.random.split(key)
    bound = 1.0 / jnp.sqrt(in_size)
    w = jax.random.uniform(
        kw, (in_size, out_size), jnp.float32, minval=-bound, maxval=bound
    )
    b = jax.random.uniform(
        kb, (out_size,), jnp.float32, minval=-bound, maxval=bound
    )
    return w, b


if __name__ == "__main__":
    # Module config (consistent with Encoder.__init__):
    #   layer_sizes = [24, 32, 32], latent_size = 16,
    #   conditional = True, context_size = 8  -> layer_sizes[0] becomes 32.
    layer_sizes = [24, 32, 32]
    latent_size = 16
    context_size = 8

    key = jax.random.PRNGKey(0)
    kx, kc, *kls = jax.random.split(key, 2 + len(layer_sizes) + 2)

    eff_sizes = [layer_sizes[0] + context_size] + layer_sizes[1:]
    mlp_params = []
    for i, (i_sz, o_sz) in enumerate(zip(eff_sizes[:-1], eff_sizes[1:])):
        mlp_params.append(_init_linear(kls[i], i_sz, o_sz))
    wm, bm = _init_linear(kls[len(eff_sizes) - 1], eff_sizes[-1], latent_size)
    wv, bv = _init_linear(kls[len(eff_sizes)], eff_sizes[-1], latent_size)
    head_params = (wm, bm, wv, bv)

    # batch=1024 exercises the 2-tile packed grid (parallel axis, even grid for
    # v7x); batch=5 exercises the odd-batch padding path.
    for batch in (1024, 5):
        kxb, kcb = jax.random.split(jax.random.fold_in(kx, batch))
        x = jax.random.normal(kxb, (batch, layer_sizes[0]), jnp.float32)
        c = jax.random.normal(kcb, (batch, context_size), jnp.float32)

        means, log_vars = encoder_forward(
            x, c, mlp_params, head_params, latent_size
        )
        jax.block_until_ready((means, log_vars))

        ref_means, ref_log_vars = _ref_forward(x, c, mlp_params, head_params)
        assert means.shape == (batch, latent_size)
        assert log_vars.shape == (batch, latent_size)
        assert jnp.allclose(means, ref_means, atol=1e-4, rtol=1e-4)
        assert jnp.allclose(log_vars, ref_log_vars, atol=1e-4, rtol=1e-4)

    print("KERNEL_OK")
</pallas_src>

<mosaic_0001>
module attributes {stable_mosaic.version = 11 : i64} {
  func.func @_encoder_kernel(%arg0: i32, %arg1: memref<128x96xf32, #tpu.memory_space<vmem>>, %arg2: memref<128x32xf32, #tpu.memory_space<vmem>>, %arg3: memref<96x128xf32, #tpu.memory_space<vmem>>, %arg4: memref<32x128xf32, #tpu.memory_space<vmem>>, %arg5: memref<1x128xf32, #tpu.memory_space<vmem>>, %arg6: memref<128x128xf32, #tpu.memory_space<vmem>>, %arg7: memref<1x128xf32, #tpu.memory_space<vmem>>, %arg8: memref<128x128xf32, #tpu.memory_space<vmem>>, %arg9: memref<1x128xf32, #tpu.memory_space<vmem>>, %arg10: memref<128x128xf32, #tpu.memory_space<vmem>>) attributes {dimension_semantics = [#tpu.dimension_semantics<parallel>], iteration_bounds = array<i64: 2>, scalar_prefetch = 0 : i64, scratch_operands = 0 : i64, tpu.core_type = #tpu.core_type<tc>, window_params = [{transform_indices = @transform_0, window_bounds = array<i64: 128, 96>}, {transform_indices = @transform_1, window_bounds = array<i64: 128, 32>}, {pipeline_mode = #tpu.pipeline_mode<synchronous>, transform_indices = @transform_2, window_bounds = array<i64: 96, 128>}, {pipeline_mode = #tpu.pipeline_mode<synchronous>, transform_indices = @transform_3, window_bounds = array<i64: 32, 128>}, {pipeline_mode = #tpu.pipeline_mode<synchronous>, transform_indices = @transform_4, window_bounds = array<i64: 1, 128>}, {pipeline_mode = #tpu.pipeline_mode<synchronous>, transform_indices = @transform_5, window_bounds = array<i64: 128, 128>}, {pipeline_mode = #tpu.pipeline_mode<synchronous>, transform_indices = @transform_6, window_bounds = array<i64: 1, 128>}, {pipeline_mode = #tpu.pipeline_mode<synchronous>, transform_indices = @transform_7, window_bounds = array<i64: 128, 128>}, {pipeline_mode = #tpu.pipeline_mode<synchronous>, transform_indices = @transform_8, window_bounds = array<i64: 1, 128>}, {transform_indices = @transform_9, window_bounds = array<i64: 128, 128>}]} {
    %c0 = arith.constant 0 : index
    %c0_0 = arith.constant 0 : index
    %0 = vector.load %arg1[%c0, %c0_0] : memref<128x96xf32, #tpu.memory_space<vmem>>, vector<128x96xf32>
    %c0_1 = arith.constant 0 : index
    %c0_2 = arith.constant 0 : index
    %1 = vector.load %arg3[%c0_1, %c0_2] : memref<96x128xf32, #tpu.memory_space<vmem>>, vector<96x128xf32>
    %cst = arith.constant dense<0.000000e+00> : vector<128x128xf32>
    %2 = tpu.matmul %0, %1, %cst {dimension_numbers = #tpu.dot_dimension_numbers<[1], [0], [0], [1], [0, 0, 1, 1], [], []>} : vector<128x96xf32>, vector<96x128xf32>, vector<128x128xf32> -> vector<128x128xf32>
    %c0_3 = arith.constant 0 : index
    %c0_4 = arith.constant 0 : index
    %3 = vector.load %arg2[%c0_3, %c0_4] : memref<128x32xf32, #tpu.memory_space<vmem>>, vector<128x32xf32>
    %c0_5 = arith.constant 0 : index
    %c0_6 = arith.constant 0 : index
    %4 = vector.load %arg4[%c0_5, %c0_6] : memref<32x128xf32, #tpu.memory_space<vmem>>, vector<32x128xf32>
    %cst_7 = arith.constant dense<0.000000e+00> : vector<128x128xf32>
    %5 = tpu.matmul %3, %4, %cst_7 {dimension_numbers = #tpu.dot_dimension_numbers<[1], [0], [0], [1], [0, 0, 1, 1], [], []>} : vector<128x32xf32>, vector<32x128xf32>, vector<128x128xf32> -> vector<128x128xf32>
    %6 = arith.addf %2, %5 : vector<128x128xf32>
    %c0_8 = arith.constant 0 : index
    %c0_9 = arith.constant 0 : index
    %7 = vector.load %arg5[%c0_8, %c0_9] : memref<1x128xf32, #tpu.memory_space<vmem>>, vector<1x128xf32>
    %8 = vector.broadcast %7 : vector<1x128xf32> to vector<128x128xf32>
    %9 = arith.addf %6, %8 : vector<128x128xf32>
    %cst_10 = arith.constant 0.000000e+00 : f32
    %10 = vector.broadcast %cst_10 : f32 to vector<128x128xf32>
    %11 = arith.maximumf %9, %10 : vector<128x128xf32>
    %c0_11 = arith.constant 0 : index
    %c0_12 = arith.constant 0 : index
    %12 = vector.load %arg6[%c0_11, %c0_12] : memref<128x128xf32, #tpu.memory_space<vmem>>, vector<128x128xf32>
    %c0_13 = arith.constant 0 : index
    %c0_14 = arith.constant 0 : index
    %13 = vector.load %arg7[%c0_13, %c0_14] : memref<1x128xf32, #tpu.memory_space<vmem>>, vector<1x128xf32>
    %cst_15 = arith.constant dense<0.000000e+00> : vector<128x128xf32>
    %14 = tpu.matmul %11, %12, %cst_15 {dimension_numbers = #tpu.dot_dimension_numbers<[1], [0], [0], [1], [0, 0, 1, 1], [], []>} : vector<128x128xf32>, vector<128x128xf32>, vector<128x128xf32> -> vector<128x128xf32>
    %15 = vector.broadcast %13 : vector<1x128xf32> to vector<128x128xf32>
    %16 = arith.addf %14, %15 : vector<128x128xf32>
    %cst_16 = arith.constant 0.000000e+00 : f32
    %17 = vector.broadcast %cst_16 : f32 to vector<128x128xf32>
    %18 = arith.maximumf %16, %17 : vector<128x128xf32>
    %c0_17 = arith.constant 0 : index
    %c0_18 = arith.constant 0 : index
    %19 = vector.load %arg8[%c0_17, %c0_18] : memref<128x128xf32, #tpu.memory_space<vmem>>, vector<128x128xf32>
    %c0_19 = arith.constant 0 : index
    %c0_20 = arith.constant 0 : index
    %20 = vector.load %arg9[%c0_19, %c0_20] : memref<1x128xf32, #tpu.memory_space<vmem>>, vector<1x128xf32>
    %cst_21 = arith.constant dense<0.000000e+00> : vector<128x128xf32>
    %21 = tpu.matmul %18, %19, %cst_21 {dimension_numbers = #tpu.dot_dimension_numbers<[1], [0], [0], [1], [0, 0, 1, 1], [], []>} : vector<128x128xf32>, vector<128x128xf32>, vector<128x128xf32> -> vector<128x128xf32>
    %22 = vector.broadcast %20 : vector<1x128xf32> to vector<128x128xf32>
    %23 = arith.addf %21, %22 : vector<128x128xf32>
    %c0_22 = arith.constant 0 : index
    %c0_23 = arith.constant 0 : index
    %24 = vector.load %arg10[%c0_22, %c0_23] : memref<128x128xf32, #tpu.memory_space<vmem>>, vector<128x128xf32>
    tpu.vector_store %arg10[%c0_22, %c0_23], %23 {strides = array<i32>} : memref<128x128xf32, #tpu.memory_space<vmem>>, vector<128x128xf32>,
    return
  }
  func.func @transform_0(%arg0: i32) -> (i32, i32) {
    %c0_i32 = arith.constant 0 : i32
    %c0_i32_0 = arith.constant 0 : i32
    return %arg0, %c0_i32 : i32, i32
  }
  func.func @transform_1(%arg0: i32) -> (i32, i32) {
    %c0_i32 = arith.constant 0 : i32
    %c0_i32_0 = arith.constant 0 : i32
    return %arg0, %c0_i32 : i32, i32
  }
  func.func @transform_2(%arg0: i32) -> (i32, i32) {
    %c0_i32 = arith.constant 0 : i32
    %c0_i32_0 = arith.constant 0 : i32
    %c0_i32_1 = arith.constant 0 : i32
    return %c0_i32, %c0_i32_0 : i32, i32
  }
  func.func @transform_3(%arg0: i32) -> (i32, i32) {
    %c0_i32 = arith.constant 0 : i32
    %c0_i32_0 = arith.constant 0 : i32
    %c0_i32_1 = arith.constant 0 : i32
    return %c0_i32, %c0_i32_0 : i32, i32
  }
  func.func @transform_4(%arg0: i32) -> (i32, i32) {
    %c0_i32 = arith.constant 0 : i32
    %c0_i32_0 = arith.constant 0 : i32
    %c0_i32_1 = arith.constant 0 : i32
    return %c0_i32, %c0_i32_0 : i32, i32
  }
  func.func @transform_5(%arg0: i32) -> (i32, i32) {
    %c0_i32 = arith.constant 0 : i32
    %c0_i32_0 = arith.constant 0 : i32
    %c0_i32_1 = arith.constant 0 : i32
    return %c0_i32, %c0_i32_0 : i32, i32
  }
  func.func @transform_6(%arg0: i32) -> (i32, i32) {
    %c0_i32 = arith.constant 0 : i32
    %c0_i32_0 = arith.constant 0 : i32
    %c0_i32_1 = arith.constant 0 : i32
    return %c0_i32, %c0_i32_0 : i32, i32
  }
  func.func @transform_7(%arg0: i32) -> (i32, i32) {
    %c0_i32 = arith.constant 0 : i32
    %c0_i32_0 = arith.constant 0 : i32
    %c0_i32_1 = arith.constant 0 : i32
    return %c0_i32, %c0_i32_0 : i32, i32
  }
  func.func @transform_8(%arg0: i32) -> (i32, i32) {
    %c0_i32 = arith.constant 0 : i32
    %c0_i32_0 = arith.constant 0 : i32
    %c0_i32_1 = arith.constant 0 : i32
    return %c0_i32, %c0_i32_0 : i32, i32
  }
  func.func @transform_9(%arg0: i32) -> (i32, i32) {
    %c0_i32 = arith.constant 0 : i32
    %c0_i32_0 = arith.constant 0 : i32
    return %arg0, %c0_i32 : i32, i32
  }
}

</mosaic_0001>

<bundles_post_ra>
// kernel: tpu_custom_call.1
= control target key start
LH: loop header
LB: loop body
LE: loop exit
PB: predicated region body
PF: predicated region fallthrough
CT: control target
= control target key end

     0   :  { %14 = vsyncpa [#allocation3], 0  ;;  %s2267_s0 = inlined_call_operand.vmem [shape: f32[256,96], index: 0, kind: input, shape index: {}]   ;;  %s2268_s1 = inlined_call_operand.vmem [shape: f32[256,32], index: 1, kind: input, shape index: {}]   ;;  %s2269_s2 = inlined_call_operand.vmem [shape: f32[96,128], index: 2, kind: input, shape index: {}]   ;;  %s2270_s3 = inlined_call_operand.vmem [shape: f32[32,128], index: 3, kind: input, shape index: {}]   ;;  %s2271_s4 = inlined_call_operand.vmem [shape: f32[1,128], index: 4, kind: input, shape index: {}]   ;;  %s2272_s5 = inlined_call_operand.vmem [shape: f32[128,128], index: 5, kind: input, shape index: {}]   ;;  %s2273_s6 = inlined_call_operand.vmem [shape: f32[1,128], index: 6, kind: input, shape index: {}]   ;;  %s2274_s7 = inlined_call_operand.vmem [shape: f32[128,128], index: 7, kind: input, shape index: {}]   ;;  %s2275_s8 = inlined_call_operand.vmem [shape: f32[1,128], index: 8, kind: input, shape index: {}]   ;;  %s2276_s9 = inlined_call_operand.hbm [shape: f32[256,128], index: 9, kind: output, shape index: {}]  }
   0x1   :  { %16 = vsyncpa [#allocation3 + $0x1], 0  ;;  %s1829_s30 = smov 0   ;;  %s1831_s10 = smov 0  }
   0x2   :  { %s1833_s11 = smov 0   ;;  %s1835_s12 = smov 0  }
   0x3 LB: > { %s1850_s13 = sadd.s32 4294967295, %s1774_s12   ;;  %s1287_s14 = sadd.s32 4294967294, %s1774_s12   ;;  %s1774_s12 = sphi %s1835_s12, %s2282_s12   ;;  %s1770_s11 = sphi %s1833_s11, %s2281_s11   ;;  %s1766_s10 = sphi %s1831_s10, %s2280_s10   ;;  %s1762_s30 = sphi %s1829_s30, %s2279_s30  }
   0x4   : > { %s1854_s15 = sadd.s32 1, %s1774_s12   ;;  %s228_s16 = sadd.s32 1, %s1770_s11 }
   0x5   : > { %s225_s17 = ssub.s32 %s1774_s12, %s1854_s15  ;;  %p238_p0 = scmp.ne.s32.totalorder %s1770_s11, %s1766_s10 }
   0x6   : > { %p226_p1 = scmp.eq.s32.totalorder %s225_s17, 0  ;;  %p239_p2 = scmp.eq.s32.totalorder %s1850_s13, 1 }
   0x7   : > { %p244_p3 = scmp.ne.s32.totalorder %s1766_s10, %s1762_s30  ;;  %p245_p4 = scmp.eq.s32.totalorder %s1287_s14, 1 }
   0x8   : > { %s1865_s18 = scalar_select %p226_p1, %s1770_s11, %s228_s16  }
   0x9   : > { %p1867_p5 = por %p239_p2, %p238_p0  ;;  %p1871_p6 = por %p245_p4, %p244_p3 }
   0xa   : > { %p1290_p7 = scmp.ge.s32.totalorder %s1774_s12, 1  ;;  %p302_p8 = scmp.lt.s32.totalorder %s1774_s12, 3 }
   0xc   : > { %p303_p9 = pnand %p1290_p7, %p302_p8 }
   0xd   : > { %s1292_s25 = sshll.u32 (!%p303_p9), %s1850_s13, 4  ;;  %s340_s28 = sand.u32 (!%p303_p9), 1, %s1766_s10  }
   0xe   : > { %306 = sbr.rel (%p303_p9) target bundleno = 685 (0x2ad), region = 56  ;;  %p344_p10 = scmp.lt.s32.totalorder (!%p303_p9), %s1292_s25, 31 }
   0xf   : > { %s1776_s27 = smov (!%p303_p9), [#allocation2]  }
  0x13   : > { %v383_v0 = vld [vmem:[%s2269_s2 + $0x58] sm:$0xff]  ;;  %v382_v1 = vld [vmem:[%s2269_s2 + $0x50] sm:$0xff]  ;;  %v381_v2 = vld [vmem:[%s2269_s2 + $0x48] sm:$0xff]  ;;  %s2284_s25 = smov (!%p344_p10, %s1292_s25), 31  ;;  %vm404_vm0 = vcmask 261120   ;;  %vm598_vm1 = vcmask 785408  }
  0x14   : > { %1481 = vmatprep.subr.mxu1 %v383_v0  ;;  %v403_v3 = vld [vmem:[%s2270_s3 + $0x18] sm:$0xff]  ;;  %v402_v4 = vld [vmem:[%s2270_s3 + $0x10] sm:$0xff]  ;;  %v380_v5 = vld [vmem:[%s2269_s2 + $0x40] sm:$0xff]  ;;  %s1293_s24 = sshll.u32 %s2284_s25, 3  ;;  %s1336_s25 = sshll.u32 %s1850_s13, 11 }
  0x15   : > { %1482 = vmatpush3.msra.mxu1 %v383_v0  ;;  %1449 = vmatprep.subr.mxu0 %v403_v3  ;;  %v401_v6 = vld [vmem:[%s2270_s3 + $0x8] sm:$0xff]  ;;  %v379_v7 = vld [vmem:[%s2269_s2 + $0x38] sm:$0xff]  ;;  %v400_v8 = vld [vmem:[%s2270_s3] sm:$0xff]  ;;  %s1908_s17 = scalar_lea.vmem %s2268_s1, %s1293_s24  ;;  %s1913_s22 = scalar_lea.vmem %s2267_s0, %s1293_s24 }
  0x16   : > { %1483 = vmatprep.subr.mxu1 %v382_v1  ;;  %1450 = vmatpush3.msra.mxu0 %v403_v3  ;;  %v378_v9 = vld [vmem:[%s2269_s2 + $0x30] sm:$0xff]  ;;  %v384_v10 = vld [vmem:[%s1908_s17] sm:$0xff]  ;;  %v385_v11 = vld [vmem:[%s1908_s17 + $0x8] sm:$0xff]  ;;  %s1291_s24 = sshll.u32 %s340_s28, 7  ;;  %s2219_s26 = scalar_lea.hbm %s2276_s9, %s1336_s25 }
  0x17   : > { %1484 = vmatpush3.msra.mxu1 %v382_v1  ;;  %1451 = vmatprep.subr.mxu0 %v402_v4  ;;  %v377_v12 = vld [vmem:[%s2269_s2 + $0x28] sm:$0xff]  ;;  %v356_v13 = vld [vmem:[%s1913_s22] sm:$0xff]  ;;  %v386_v14 = vld [vmem:[%s1908_s17 + $0x10] sm:$0xff]  ;;  %s2198_s16 = scalar_lea.vmem [#allocation2], %s1291_s24  ;;  %s2227_s13 = scalar_lea.sflag [#allocation3], %s340_s28 }
  0x18   : > { %1485 = vmatprep.subr.mxu1 %v381_v2  ;;  %1452 = vmatpush3.msra.mxu0 %v402_v4  ;;  %v376_v15 = vld [vmem:[%s2269_s2 + $0x20] sm:$0xff]  ;;  %v846_v16 = vld [vmem:[%s2272_s5 + $0x78] sm:$0xff]  ;;  %v374_v20 = vld [vmem:[%s2269_s2 + $0x10] sm:$0xff]  ;;  %s1213_s21 = sshll.u32 %s2198_s16, 4  ;;  %s1718_s24 = sshll.u32 %s1776_s27, 4  ;;  %s2221_s21 = int_to_ptr.vmem [resolvable:$true] %s1213_s21  ;;  %s1719_s24 = int_to_ptr.vmem [resolvable:$false] %s1718_s24 }
  0x19   : > { %1486 = vmatpush3.msra.mxu1 %v381_v2  ;;  %1453 = vmatprep.subr.mxu0 %v401_v6  ;;  %v387_v17 = vld [vmem:[%s1908_s17 + $0x18] sm:$0xff]  ;;  %v388_v19 = vld [vmem:[%s1908_s17 + $0x20] sm:$0xff]  ;;  %v845_v21 = vld [vmem:[%s2272_s5 + $0x70] sm:$0xff]  ;;  %s1720_s29 = scalar_lea.vmem %s1719_s24, 4096  ;;  %p1721_p0 = scmp.lt.s32.totalorder %s2221_s21, %s1719_s24 }
  0x1a   : > { %1487 = vmatprep.subr.mxu1 %v380_v5  ;;  %1454 = vmatpush3.msra.mxu0 %v401_v6  ;;  %v375_v18 = vld [vmem:[%s2269_s2 + $0x18] sm:$0xff]  ;;  %v389_v22 = vld [vmem:[%s1908_s17 + $0x28] sm:$0xff]  ;;  %v390_v24 = vld [vmem:[%s1908_s17 + $0x30] sm:$0xff] }
  0x1b   : > { %1488 = vmatpush3.msra.mxu1 %v380_v5  ;;  %1455 = vmatprep.subr.mxu0 %v400_v8  ;;  %v373_v23 = vld [vmem:[%s2269_s2 + $0x8] sm:$0xff]  ;;  %v372_v25 = vld [vmem:[%s2269_s2] sm:$0xff]  ;;  %v391_v27 = vld [vmem:[%s1908_s17 + $0x38] sm:$0xff] }
  0x1c   : > { %1489 = vmatprep.subr.mxu1 %v379_v7  ;;  %1456 = vmatpush3.msra.mxu0 %v400_v8  ;;  %v844_v26 = vld [vmem:[%s2272_s5 + $0x68] sm:$0xff]  ;;  %v392_v29 = vld [vmem:[%s1908_s17 + $0x40] sm:$0xff]  ;;  %v358_v30 = vld [vmem:[%s1913_s22 + $0x10] sm:$0xff] }
  0x1d   : > { %1490 = vmatpush3.msra.mxu1 %v379_v7  ;;  %1457 = vmatprep.mubr.msk.f32.mxu0 %vm404_vm0, %v384_v10  ;;  %v357_v28 = vld [vmem:[%s1913_s22 + $0x8] sm:$0xff]  ;;  %v843_v31 = vld [vmem:[%s2272_s5 + $0x60] sm:$0xff]  ;;  %v359_v33 = vld [vmem:[%s1913_s22 + $0x18] sm:$0xff] }
  0x1e   : > { %1491 = vmatprep.subr.mxu1 %v378_v9  ;;  %1458 = vmatmul.mubr.msk.f32.vlgmr.msra.gmra.mxu0 %vm404_vm0, %v385_v11  ;;  %v393_v32 = vld [vmem:[%s1908_s17 + $0x48] sm:$0xff]  ;;  %v394_v34 = vld [vmem:[%s1908_s17 + $0x50] sm:$0xff]  ;;  %v360_v35 = vld [vmem:[%s1913_s22 + $0x20] sm:$0xff] }
  0x1f   : > { %1492 = vmatpush3.msra.mxu1 %v378_v9  ;;  %1505 = vmatprep.mubr.msk.f32.mxu1 %vm598_vm1, %v356_v13  ;;  %v842_v36 = vld [vmem:[%s2272_s5 + $0x58] sm:$0xff]  ;;  %v361_v38 = vld [vmem:[%s1913_s22 + $0x28] sm:$0xff]  ;;  %v396_v39 = vld [vmem:[%s1908_s17 + $0x60] sm:$0xff] }
  0x20   : > { %1493 = vmatprep.subr.mxu1 %v377_v12  ;;  %1460 = vmatprep.mubr.msk.f32.mxu0 %vm404_vm0, %v386_v14  ;;  %v395_v37 = vld [vmem:[%s1908_s17 + $0x58] sm:$0xff]  ;;  %v362_v40 = vld [vmem:[%s1913_s22 + $0x30] sm:$0xff]  ;;  %v397_v42 = vld [vmem:[%s1908_s17 + $0x68] sm:$0xff] }
  0x21   : > { %1494 = vmatpush3.msra.mxu1 %v377_v12  ;;  %1529 = vmatprep.subr.mxu0 %v846_v16  ;;  %v841_v41 = vld [vmem:[%s2272_s5 + $0x50] sm:$0xff]  ;;  %v363_v43 = vld [vmem:[%s1913_s22 + $0x38] sm:$0xff]  ;;  %v364_v45 = vld [vmem:[%s1913_s22 + $0x40] sm:$0xff] }
  0x22   : > { %1495 = vmatprep.subr.mxu1 %v376_v15  ;;  %1461 = vmatmul.mubr.msk.f32.gmra.mxu0 %vm404_vm0, %v387_v17  ;;  %v398_v44 = vld [vmem:[%s1908_s17 + $0x70] sm:$0xff]  ;;  %v840_v46 = vld [vmem:[%s2272_s5 + $0x48] sm:$0xff]  ;;  %v399_v47 = vld [vmem:[%s1908_s17 + $0x78] sm:$0xff]  ;;  %s1714_s17 = scalar_lea.vmem %s2221_s21, 2048 }
  0x23   : > { %1496 = vmatpush3.msra.mxu1 %v376_v15  ;;  %1463 = vmatprep.mubr.msk.f32.mxu0 %vm404_vm0, %v388_v19  ;;  %v365_v48 = vld [vmem:[%s1913_s22 + $0x48] sm:$0xff]  ;;  %v366_v49 = vld [vmem:[%s1913_s22 + $0x50] sm:$0xff]  ;;  %v839_v50 = vld [vmem:[%s2272_s5 + $0x40] sm:$0xff]  ;;  %p1715_p11 = scmp.ne.s32.totalorder %s2221_s21, %s1714_s17  ;;  %p1722_p1 = scmp.lt.s32.totalorder %s1720_s29, %s1714_s17 }
  0x24   : > { %1497 = vmatprep.subr.mxu1 %v375_v18  ;;  %1530 = vmatpush3.msra.mxu0 %v846_v16  ;;  %v838_v51 = vld [vmem:[%s2272_s5 + $0x38] sm:$0xff]  ;;  %v368_v53 = vld [vmem:[%s1913_s22 + $0x60] sm:$0xff]  ;;  %v837_v54 = vld [vmem:[%s2272_s5 + $0x30] sm:$0xff] }
  0x25   : > { %1498 = vmatpush3.msra.mxu1 %v375_v18  ;;  %1531 = vmatprep.subr.mxu0 %v845_v21  ;;  %v367_v52 = vld [vmem:[%s1913_s22 + $0x58] sm:$0xff]  ;;  %v836_v55 = vld [vmem:[%s2272_s5 + $0x28] sm:$0xff]  ;;  %v370_v57 = vld [vmem:[%s1913_s22 + $0x70] sm:$0xff]  ;;  %p1716_p12 = pnand %p1715_p11, %p1867_p5  ;;  %p1723_p2 = por %p1722_p1, %p1721_p0 }
  0x26   : > { %1499 = vmatprep.subr.mxu1 %v374_v20  ;;  %1464 = vmatmul.mubr.msk.f32.gmra.mxu0 %vm404_vm0, %v389_v22  ;;  %v369_v56 = vld [vmem:[%s1913_s22 + $0x68] sm:$0xff]  ;;  %v371_v58 = vld [vmem:[%s1913_s22 + $0x78] sm:$0xff]  ;;  %v835_v59 = vld [vmem:[%s2272_s5 + $0x20] sm:$0xff] }
  0x27   : > { %1500 = vmatpush3.msra.mxu1 %v374_v20  ;;  %1466 = vmatprep.mubr.msk.f32.mxu0 %vm404_vm0, %v390_v24  ;;  %v834_v60 = vld [vmem:[%s2272_s5 + $0x18] sm:$0xff]  ;;  %v833_v61 = vld [vmem:[%s2272_s5 + $0x10] sm:$0xff]  ;;  %v832_v62 = vld [vmem:[%s2272_s5 + $0x8] sm:$0xff]  ;;  %p1717_p13 = pneg %p1716_p12 }
  0x28   : > { %1501 = vmatprep.subr.mxu1 %v373_v23  ;;  %1532 = vmatpush3.msra.mxu0 %v845_v21  ;;  %v831_v63 = vld [vmem:[%s2272_s5] sm:$0xff]  ;;  %v2051_v0 = vld [vmem:[%s2274_s7 + $0x78] sm:$0xff]  ;;  %v2058_v1 = vld [vmem:[%s2274_s7 + $0x70] sm:$0xff] }
  0x29   : > { %1502 = vmatpush3.msra.mxu1 %v373_v23  ;;  %1533 = vmatprep.subr.mxu0 %v844_v26  ;;  %v2065_v2 = vld [vmem:[%s2274_s7 + $0x68] sm:$0xff]  ;;  %v2072_v3 = vld [vmem:[%s2274_s7 + $0x60] sm:$0xff]  ;;  %v2079_v4 = vld [vmem:[%s2274_s7 + $0x58] sm:$0xff]  ;;  %p1724_p3 = pnand %p1723_p2, %p1717_p13 }
  0x2a   : > { %1503 = vmatprep.subr.mxu1 %v372_v25  ;;  %1467 = vmatmul.mubr.msk.f32.gmra.mxu0 %vm404_vm0, %v391_v27  ;;  %v2086_v5 = vld [vmem:[%s2274_s7 + $0x50] sm:$0xff]  ;;  %v2093_v6 = vld [vmem:[%s2274_s7 + $0x48] sm:$0xff]  ;;  %v2100_v7 = vld [vmem:[%s2274_s7 + $0x40] sm:$0xff] }
  0x2b   : > { %1504 = vmatpush3.msra.mxu1 %v372_v25  ;;  %1469 = vmatprep.mubr.msk.f32.mxu0 %vm404_vm0, %v392_v29  ;;  %v2107_v8 = vld [vmem:[%s2274_s7 + $0x38] sm:$0xff]  ;;  %v2114_v9 = vld [vmem:[%s2274_s7 + $0x30] sm:$0xff]  ;;  %v2121_v10 = vld [vmem:[%s2274_s7 + $0x28] sm:$0xff] }
  0x2c   : > { %1506 = vmatmul.mubr.msk.f32.vlgmr.msra.gmra.mxu1 %vm598_vm1, %v357_v28  ;;  %1534 = vmatpush3.msra.mxu0 %v844_v26  ;;  %v2128_v11 = vld [vmem:[%s2274_s7 + $0x20] sm:$0xff] }
  0x2d   : > { %1508 = vmatprep.mubr.msk.f32.mxu1 %vm598_vm1, %v358_v30  ;;  %1535 = vmatprep.subr.mxu0 %v843_v31  ;;  %v2136_v21 = vld [vmem:[%s2271_s4] ss:$0 sm:$0xff] }
  0x2e   : > { %1470 = vmatmul.mubr.msk.f32.gmra.mxu0 %vm404_vm0, %v393_v32  ;;  %1641 = vmatprep.subr.mxu1 %v2051_v0 }
  0x2f   : > { %1472 = vmatprep.mubr.msk.f32.mxu0 %vm404_vm0, %v394_v34  ;;  %1536 = vmatpush3.msra.mxu0 %v843_v31 }
  0x30   : > { %1509 = vmatmul.mubr.msk.f32.gmra.mxu1 %vm598_vm1, %v359_v33  ;;  %1537 = vmatprep.subr.mxu0 %v842_v36 }
  0x31   : > { %1511 = vmatprep.mubr.msk.f32.mxu1 %vm598_vm1, %v360_v35  ;;  %1538 = vmatpush3.msra.mxu0 %v842_v36 }
  0x32   : > { %1473 = vmatmul.mubr.msk.f32.gmra.mxu0 %vm404_vm0, %v395_v37  ;;  %1539 = vmatprep.subr.mxu0 %v841_v41 }
  0x33   : > { %1475 = vmatprep.mubr.msk.f32.mxu0 %vm404_vm0, %v396_v39  ;;  %1540 = vmatpush3.msra.mxu0 %v841_v41 }
  0x34   : > { %1512 = vmatmul.mubr.msk.f32.gmra.mxu1 %vm598_vm1, %v361_v38  ;;  %1541 = vmatprep.subr.mxu0 %v840_v46 }
  0x35   : > { %1514 = vmatprep.mubr.msk.f32.mxu1 %vm598_vm1, %v362_v40  ;;  %1542 = vmatpush3.msra.mxu0 %v840_v46 }
  0x36   : > { %1476 = vmatmul.mubr.msk.f32.gmra.mxu0 %vm404_vm0, %v397_v42  ;;  %1543 = vmatprep.subr.mxu0 %v839_v50 }
  0x37   : > { %1478 = vmatprep.mubr.msk.f32.mxu0 %vm404_vm0, %v398_v44  ;;  %1544 = vmatpush3.msra.mxu0 %v839_v50 }
  0x38   : > { %1515 = vmatmul.mubr.msk.f32.gmra.mxu1 %vm598_vm1, %v363_v43  ;;  %1545 = vmatprep.subr.mxu0 %v838_v51 }
  0x39   : > { %1517 = vmatprep.mubr.msk.f32.mxu1 %vm598_vm1, %v364_v45  ;;  %1546 = vmatpush3.msra.mxu0 %v838_v51 }
  0x3a   : > { %1479 = vmatmul.mubr.msk.f32.gmra.mxu0 %vm404_vm0, %v399_v47  ;;  %1547 = vmatprep.subr.mxu0 %v837_v54 }
  0x3b   : > { %1548 = vmatpush3.msra.mxu0 %v837_v54  ;;  %1657 = vmatpush3.msra.mxu1 %v2051_v0 }
  0x3c   : > { %1518 = vmatmul.mubr.msk.f32.gmra.mxu1 %vm598_vm1, %v365_v48  ;;  %1549 = vmatprep.subr.mxu0 %v836_v55 }
  0x3d   : > { %1520 = vmatprep.mubr.msk.f32.mxu1 %vm598_vm1, %v366_v49  ;;  %1550 = vmatpush3.msra.mxu0 %v836_v55 }
  0x3e   : > { %1551 = vmatprep.subr.mxu0 %v835_v59  ;;  %1642 = vmatprep.subr.mxu1 %v2058_v1 }
  0x3f   : > { %1552 = vmatpush3.msra.mxu0 %v835_v59  ;;  %1658 = vmatpush3.msra.mxu1 %v2058_v1 }
  0x40   : > { %1521 = vmatmul.mubr.msk.f32.gmra.mxu1 %vm598_vm1, %v367_v52  ;;  %1553 = vmatprep.subr.mxu0 %v834_v60 }
  0x41   : > { %1523 = vmatprep.mubr.msk.f32.mxu1 %vm598_vm1, %v368_v53  ;;  %1554 = vmatpush3.msra.mxu0 %v834_v60 }
  0x42   : > { %1555 = vmatprep.subr.mxu0 %v833_v61  ;;  %1643 = vmatprep.subr.mxu1 %v2065_v2 }
  0x43   : > { %1556 = vmatpush3.msra.mxu0 %v833_v61  ;;  %1659 = vmatpush3.msra.mxu1 %v2065_v2 }
  0x44   : > { %1524 = vmatmul.mubr.msk.f32.gmra.mxu1 %vm598_vm1, %v369_v56  ;;  %1557 = vmatprep.subr.mxu0 %v832_v62 }
  0x45   : > { %1526 = vmatprep.mubr.msk.f32.mxu1 %vm598_vm1, %v370_v57  ;;  %1558 = vmatpush3.msra.mxu0 %v832_v62 }
  0x46   : > { %1559 = vmatprep.subr.mxu0 %v831_v63  ;;  %1644 = vmatprep.subr.mxu1 %v2072_v3 }
  0x47   : > { %1560 = vmatpush3.msra.mxu0 %v831_v63  ;;  %1660 = vmatpush3.msra.mxu1 %v2072_v3 }
  0x48   : > { %1527 = vmatmul.mubr.msk.f32.gmra.mxu1 %vm598_vm1, %v371_v58  ;;  %1585 = vmatprep.subr.mxu0 %v2051_v0 }
  0x49   : > { %1645 = vmatprep.subr.mxu1 %v2079_v4 }
  0x4a   : > { %1661 = vmatpush3.msra.mxu1 %v2079_v4 }
  0x4b   : > { %1646 = vmatprep.subr.mxu1 %v2086_v5 }
  0x4c   : > { %1662 = vmatpush3.msra.mxu1 %v2086_v5 }
  0x4d   : > { %1647 = vmatprep.subr.mxu1 %v2093_v6 }
  0x4e   : > { %1663 = vmatpush3.msra.mxu1 %v2093_v6 }
  0x4f   : > { %1648 = vmatprep.subr.mxu1 %v2100_v7 }
  0x50   : > { %1664 = vmatpush3.msra.mxu1 %v2100_v7 }
  0x51   : > { %1649 = vmatprep.subr.mxu1 %v2107_v8 }
  0x52   : > { %1665 = vmatpush3.msra.mxu1 %v2107_v8 }
  0x53   : > { %1650 = vmatprep.subr.mxu1 %v2114_v9 }
  0x54   : > { %1666 = vmatpush3.msra.mxu1 %v2114_v9 }
  0x55   : > { %1651 = vmatprep.subr.mxu1 %v2121_v10 }
  0x56   : > { %1667 = vmatpush3.msra.mxu1 %v2121_v10 }
  0x57   : > { %1652 = vmatprep.subr.mxu1 %v2128_v11 }
  0x58   : > { %1668 = vmatpush3.msra.mxu1 %v2128_v11 }
  0xde   : > { %v1459_v12 = vpop.f32.mrf.mxu0 }
  0xe0   : > { %v519_v13 = vpop.f32.mrf.mxu0 }
  0xe2   : > { %v1462_v14 = vpop.f32.mrf.mxu0 }
  0xe4   : > { %v529_v15 = vpop.f32.mrf.mxu0 }
  0xe6   : > { %v1465_v16 = vpop.f32.mrf.mxu0 }
  0xe8   : > { %v539_v17 = vpop.f32.mrf.mxu0 }
  0xea   : > { %v1468_v18 = vpop.f32.mrf.mxu0 }
  0xec   : > { %v1507_v19 = vpop.f32.mrf.mxu1  ;;  %v549_v22 = vpop.f32.mrf.mxu0 }
  0xed   : > { %v719_v20 = vadd.f32 %v1507_v19, %v1459_v12 }
  0xee   : > { %v713_v23 = vpop.f32.mrf.mxu1  ;;  %v1471_v25 = vpop.f32.mrf.mxu0 }
  0xef   : > { %v714_v24 = vadd.f32 %v713_v23, %v519_v13  ;;  %v800_v26 = vadd.f32 %v2136_v21, %v719_v20 }
  0xf0   : > { %v1510_v27 = vpop.f32.mrf.mxu1  ;;  %v559_v31 = vpop.f32.mrf.mxu0 }
  0xf1   : > { %v799_v28 = vadd.f32 %v2136_v21, %v714_v24  ;;  %v729_v29 = vadd.f32 %v1510_v27, %v1462_v14  ;;  %v816_v34 = vmax.f32 %v800_v26, 0.0 }
  0xf2   : > { %v723_v30 = vpop.f32.mrf.mxu1  ;;  %v1474_v40 = vpop.f32.mrf.mxu0 }
  0xf3   : > { %v815_v32 = vmax.f32 %v799_v28, 0.0  ;;  %v724_v33 = vadd.f32 %v723_v30, %v529_v15  ;;  %v802_v35 = vadd.f32 %v2136_v21, %v729_v29 }
  0xf4   : > { %v1513_v36 = vpop.f32.mrf.mxu1  ;;  %v569_v49 = vpop.f32.mrf.mxu0 }
  0xf5   : > { %v801_v37 = vadd.f32 %v2136_v21, %v724_v33  ;;  %v739_v38 = vadd.f32 %v1513_v36, %v1465_v16  ;;  %1561 = vmatprep.mubr.f32.mxu0 %v815_v32  ;;  %v818_v43 = vmax.f32 %v802_v35, 0.0  ;;  %v1018_v32 = vld [vmem:[%s2274_s7 + $0x18] sm:$0xff]  ;;  %v1329_v33 = vld [vmem:[%s2273_s6] ss:$0 sm:$0xff] }
  0xf6   : > { %v733_v39 = vpop.f32.mrf.mxu1  ;;  %1562 = vmatmul.mubr.f32.vlgmr.msra.gmra.mxu0 %v816_v34  ;;  %v1477_v58 = vpop.f32.mrf.mxu0  ;;  %1653 = vmatprep.subr.mxu1 %v1018_v32 }
  0xf7   : > { %v817_v41 = vmax.f32 %v801_v37, 0.0  ;;  %v734_v42 = vadd.f32 %v733_v39, %v539_v17  ;;  %1586 = vmatpush3.msra.mxu0 %v2051_v0  ;;  %v804_v44 = vadd.f32 %v2136_v21, %v739_v38  ;;  %1669 = vmatpush3.msra.mxu1 %v1018_v32 }
  0xf8   : > { %v1516_v45 = vpop.f32.mrf.mxu1  ;;  %1587 = vmatprep.subr.mxu0 %v2058_v1 }
  0xf9   : > { %v803_v46 = vadd.f32 %v2136_v21, %v734_v42  ;;  %v749_v47 = vadd.f32 %v1516_v45, %v1468_v18  ;;  %1564 = vmatprep.mubr.f32.mxu0 %v817_v41  ;;  %1588 = vmatpush3.msra.mxu0 %v2058_v1  ;;  %v820_v52 = vmax.f32 %v804_v44, 0.0 }
  0xfa   : > { %v743_v48 = vpop.f32.mrf.mxu1  ;;  %1565 = vmatmul.mubr.f32.gmra.mxu0 %v818_v43  ;;  %1589 = vmatprep.subr.mxu0 %v2065_v2 }
  0xfb   : > { %v819_v50 = vmax.f32 %v803_v46, 0.0  ;;  %v744_v51 = vadd.f32 %v743_v48, %v549_v22  ;;  %1590 = vmatpush3.msra.mxu0 %v2065_v2  ;;  %v806_v53 = vadd.f32 %v2136_v21, %v749_v47 }
  0xfc   : > { %v1519_v54 = vpop.f32.mrf.mxu1  ;;  %1591 = vmatprep.subr.mxu0 %v2072_v3 }
  0xfd   : > { %v805_v55 = vadd.f32 %v2136_v21, %v744_v51  ;;  %v759_v56 = vadd.f32 %v1519_v54, %v1471_v25  ;;  %1567 = vmatprep.mubr.f32.mxu0 %v819_v50  ;;  %1592 = vmatpush3.msra.mxu0 %v2072_v3  ;;  %v822_v61 = vmax.f32 %v806_v53, 0.0  ;;  %v579_v3 = vpop.f32.mrf.mxu0 }
  0xfe   : > { %v753_v57 = vpop.f32.mrf.mxu1  ;;  %1568 = vmatmul.mubr.f32.gmra.mxu0 %v820_v52  ;;  %1593 = vmatprep.subr.mxu0 %v2079_v4 }
  0xff   : > { %v821_v59 = vmax.f32 %v805_v55, 0.0  ;;  %v754_v60 = vadd.f32 %v753_v57, %v559_v31  ;;  %1594 = vmatpush3.msra.mxu0 %v2079_v4  ;;  %v808_v62 = vadd.f32 %v2136_v21, %v759_v56 }
 0x100   : > { %v1522_v63 = vpop.f32.mrf.mxu1  ;;  %1595 = vmatprep.subr.mxu0 %v2086_v5 }
 0x101   : > { %v807_v0 = vadd.f32 %v2136_v21, %v754_v60  ;;  %v769_v1 = vadd.f32 %v1522_v63, %v1474_v40  ;;  %1570 = vmatprep.mubr.f32.mxu0 %v821_v59  ;;  %1596 = vmatpush3.msra.mxu0 %v2086_v5  ;;  %v824_v4 = vmax.f32 %v808_v62, 0.0  ;;  %v1480_v5 = vpop.f32.mrf.mxu0 }
 0x102   : > { %v763_v2 = vpop.f32.mrf.mxu1  ;;  %1571 = vmatmul.mubr.f32.gmra.mxu0 %v822_v61  ;;  %1597 = vmatprep.subr.mxu0 %v2093_v6 }
 0x103   : > { %v823_v12 = vmax.f32 %v807_v0, 0.0  ;;  %v764_v13 = vadd.f32 %v763_v2, %v569_v49  ;;  %1598 = vmatpush3.msra.mxu0 %v2093_v6  ;;  %v810_v14 = vadd.f32 %v2136_v21, %v769_v1 }
 0x104   : > { %v1525_v15 = vpop.f32.mrf.mxu1  ;;  %1599 = vmatprep.subr.mxu0 %v2100_v7 }
 0x105   : > { %v809_v16 = vadd.f32 %v2136_v21, %v764_v13  ;;  %v779_v17 = vadd.f32 %v1525_v15, %v1477_v58  ;;  %1573 = vmatprep.mubr.f32.mxu0 %v823_v12  ;;  %1600 = vmatpush3.msra.mxu0 %v2100_v7  ;;  %v826_v6 = vmax.f32 %v810_v14, 0.0  ;;  %v589_v7 = vpop.f32.mrf.mxu0 }
 0x106   : > { %v773_v18 = vpop.f32.mrf.mxu1  ;;  %1574 = vmatmul.mubr.f32.gmra.mxu0 %v824_v4  ;;  %1601 = vmatprep.subr.mxu0 %v2107_v8 }
 0x107   : > { %v825_v19 = vmax.f32 %v809_v16, 0.0  ;;  %v774_v20 = vadd.f32 %v773_v18, %v579_v3  ;;  %1602 = vmatpush3.msra.mxu0 %v2107_v8  ;;  %v812_v22 = vadd.f32 %v2136_v21, %v779_v17 }
 0x108   : > { %v1528_v23 = vpop.f32.mrf.mxu1  ;;  %1603 = vmatprep.subr.mxu0 %v2114_v9 }
 0x109   : > { %v811_v24 = vadd.f32 %v2136_v21, %v774_v20  ;;  %v789_v25 = vadd.f32 %v1528_v23, %v1480_v5  ;;  %1576 = vmatprep.mubr.f32.mxu0 %v825_v19  ;;  %1604 = vmatpush3.msra.mxu0 %v2114_v9  ;;  %v828_v8 = vmax.f32 %v812_v22, 0.0 }
 0x10a   : > { %v783_v26 = vpop.f32.mrf.mxu1  ;;  %1577 = vmatmul.mubr.f32.gmra.mxu0 %v826_v6  ;;  %1605 = vmatprep.subr.mxu0 %v2121_v10 }
 0x10b   : > { %v827_v27 = vmax.f32 %v811_v24, 0.0  ;;  %v784_v28 = vadd.f32 %v783_v26, %v589_v7  ;;  %1606 = vmatpush3.msra.mxu0 %v2121_v10  ;;  %v814_v29 = vadd.f32 %v2136_v21, %v789_v25  ;;  %v1017_v10 = vld [vmem:[%s2274_s7 + $0x10] sm:$0xff]  ;;  %v1330_v24 = vld [vmem:[%s2275_s8] ss:$0 sm:$0xff] }
 0x10c   : > { %1607 = vmatprep.subr.mxu0 %v2128_v11  ;;  %1654 = vmatprep.subr.mxu1 %v1017_v10 }
 0x10d   : > { %v813_v30 = vadd.f32 %v2136_v21, %v784_v28  ;;  %1579 = vmatprep.mubr.f32.mxu0 %v827_v27  ;;  %1608 = vmatpush3.msra.mxu0 %v2128_v11  ;;  %v830_v31 = vmax.f32 %v814_v29, 0.0  ;;  %v1016_v11 = vld [vmem:[%s2274_s7 + $0x8] sm:$0xff]  ;;  %v1015_v21 = vld [vmem:[%s2274_s7] sm:$0xff] }
 0x10e   : > { %1580 = vmatmul.mubr.f32.gmra.mxu0 %v828_v8  ;;  %1609 = vmatprep.subr.mxu0 %v1018_v32 }
 0x10f   : > { %v829_v9 = vmax.f32 %v813_v30, 0.0  ;;  %1610 = vmatpush3.msra.mxu0 %v1018_v32  ;;  %1670 = vmatpush3.msra.mxu1 %v1017_v10 }
 0x110   : > { %1611 = vmatprep.subr.mxu0 %v1017_v10  ;;  %1655 = vmatprep.subr.mxu1 %v1016_v11 }
 0x111   : > { %1582 = vmatprep.mubr.f32.mxu0 %v829_v9  ;;  %1612 = vmatpush3.msra.mxu0 %v1017_v10 }
 0x112   : > { %1583 = vmatmul.mubr.f32.gmra.mxu0 %v830_v31  ;;  %1613 = vmatprep.subr.mxu0 %v1016_v11 }
 0x113   : > { %1614 = vmatpush3.msra.mxu0 %v1016_v11  ;;  %1671 = vmatpush3.msra.mxu1 %v1016_v11 }
 0x114   : > { %1615 = vmatprep.subr.mxu0 %v1015_v21  ;;  %1656 = vmatprep.subr.mxu1 %v1015_v21 }
 0x115   : > { %1616 = vmatpush3.msra.mxu0 %v1015_v21  ;;  %1672 = vmatpush3.msra.mxu1 %v1015_v21 }
 0x1b6   : > { %v1563_v34 = vpop.f32.mrf.mxu0 }
 0x1b7   : > { %v926_v35 = vadd.f32 %v1563_v34, %v1329_v33 }
 0x1b8   : > { %v920_v36 = vpop.f32.mrf.mxu0 }
 0x1b9   : > { %v921_v37 = vadd.f32 %v1329_v33, %v920_v36  ;;  %v1000_v40 = vmax.f32 %v926_v35, 0.0 }
 0x1ba   : > { %v1566_v38 = vpop.f32.mrf.mxu0 }
 0x1bb   : > { %v999_v39 = vmax.f32 %v921_v37, 0.0  ;;  %v936_v41 = vadd.f32 %v1566_v38, %v1329_v33 }
 0x1bc   : > { %v930_v42 = vpop.f32.mrf.mxu0 }
 0x1bd   : > { %v931_v43 = vadd.f32 %v1329_v33, %v930_v42  ;;  %1617 = vmatprep.mubr.f32.mxu0 %v999_v39  ;;  %v1002_v46 = vmax.f32 %v936_v41, 0.0 }
 0x1be   : > { %v1569_v44 = vpop.f32.mrf.mxu0  ;;  %1618 = vmatmul.mubr.f32.vlgmr.msra.gmra.mxu0 %v1000_v40 }
 0x1bf   : > { %v1001_v45 = vmax.f32 %v931_v43, 0.0  ;;  %v946_v47 = vadd.f32 %v1569_v44, %v1329_v33 }
 0x1c0   : > { %v940_v48 = vpop.f32.mrf.mxu0 }
 0x1c1   : > { %v941_v49 = vadd.f32 %v1329_v33, %v940_v48  ;;  %1620 = vmatprep.mubr.f32.mxu0 %v1001_v45  ;;  %v1004_v52 = vmax.f32 %v946_v47, 0.0 }
 0x1c2   : > { %v1572_v50 = vpop.f32.mrf.mxu0  ;;  %1621 = vmatmul.mubr.f32.gmra.mxu0 %v1002_v46 }
 0x1c3   : > { %v1003_v51 = vmax.f32 %v941_v49, 0.0  ;;  %v956_v53 = vadd.f32 %v1572_v50, %v1329_v33 }
 0x1c4   : > { %v950_v54 = vpop.f32.mrf.mxu0 }
 0x1c5   : > { %v951_v55 = vadd.f32 %v1329_v33, %v950_v54  ;;  %1623 = vmatprep.mubr.f32.mxu1 %v1003_v51  ;;  %v1006_v58 = vmax.f32 %v956_v53, 0.0 }
 0x1c6   : > { %v1575_v56 = vpop.f32.mrf.mxu0  ;;  %1624 = vmatmul.mubr.f32.vlgmr.msra.gmra.mxu1 %v1004_v52 }
 0x1c7   : > { %v1005_v57 = vmax.f32 %v951_v55, 0.0  ;;  %v966_v59 = vadd.f32 %v1575_v56, %v1329_v33 }
 0x1c8   : > { %v960_v60 = vpop.f32.mrf.mxu0 }
 0x1c9   : > { %v961_v61 = vadd.f32 %v1329_v33, %v960_v60  ;;  %1626 = vmatprep.mubr.f32.mxu1 %v1005_v57  ;;  %v1008_v0 = vmax.f32 %v966_v59, 0.0 }
 0x1ca   : > { %v1578_v62 = vpop.f32.mrf.mxu0  ;;  %1627 = vmatmul.mubr.f32.gmra.mxu1 %v1006_v58 }
 0x1cb   : > { %v1007_v63 = vmax.f32 %v961_v61, 0.0  ;;  %v976_v1 = vadd.f32 %v1578_v62, %v1329_v33 }
 0x1cc   : > { %v970_v2 = vpop.f32.mrf.mxu0 }
 0x1cd   : > { %v971_v3 = vadd.f32 %v1329_v33, %v970_v2  ;;  %1629 = vmatprep.mubr.f32.mxu1 %v1007_v63  ;;  %v1010_v4 = vmax.f32 %v976_v1, 0.0 }
 0x1ce   : > { %v1581_v12 = vpop.f32.mrf.mxu0  ;;  %1630 = vmatmul.mubr.f32.gmra.mxu1 %v1008_v0 }
 0x1cf   : > { %v1009_v13 = vmax.f32 %v971_v3, 0.0  ;;  %v986_v14 = vadd.f32 %v1581_v12, %v1329_v33 }
 0x1d0   : > { %v980_v15 = vpop.f32.mrf.mxu0 }
 0x1d1   : > { %v981_v16 = vadd.f32 %v1329_v33, %v980_v15  ;;  %1632 = vmatprep.mubr.f32.mxu1 %v1009_v13  ;;  %v1012_v18 = vmax.f32 %v986_v14, 0.0 }
 0x1d2   : > { %v1584_v17 = vpop.f32.mrf.mxu0  ;;  %1633 = vmatmul.mubr.f32.gmra.mxu1 %v1010_v4 }
 0x1d3   : > { %v1011_v5 = vmax.f32 %v981_v16, 0.0  ;;  %v996_v19 = vadd.f32 %v1584_v17, %v1329_v33 }
 0x1d4   : > { %v990_v20 = vpop.f32.mrf.mxu0 }
 0x1d5   : > { %v991_v6 = vadd.f32 %v1329_v33, %v990_v20  ;;  %1635 = vmatprep.mubr.f32.mxu1 %v1011_v5  ;;  %v1014_v23 = vmax.f32 %v996_v19, 0.0 }
 0x1d6   : > { %1636 = vmatmul.mubr.f32.gmra.mxu1 %v1012_v18 }
 0x1d7   : > { %v1013_v22 = vmax.f32 %v991_v6, 0.0 }
 0x1d9   : > { %1638 = vmatprep.mubr.f32.mxu1 %v1013_v22 }
 0x1da   : > { %1639 = vmatmul.mubr.f32.gmra.mxu1 %v1014_v23 }
 0x27e   : > { %v1619_v25 = vpop.f32.mrf.mxu0 }
 0x27f   : > { %v1110_v7 = vadd.f32 %v1619_v25, %v1330_v24 }
 0x280   : > { %v1104_v26 = vpop.f32.mrf.mxu0 }
 0x281   : > { %1184 = vst [vmem:[%s2198_s16 + $0x8] sm:$0xff] %v1110_v7  ;;  %v1105_v27 = vadd.f32 %v1330_v24, %v1104_v26 }
 0x282   : > { %v1622_v28 = vpop.f32.mrf.mxu0 }
 0x283   : > { %1183 = vst [vmem:[%s2198_s16] sm:$0xff] %v1105_v27  ;;  %v1120_v8 = vadd.f32 %v1622_v28, %v1330_v24 }
 0x284   : > { %v1114_v29 = vpop.f32.mrf.mxu0 }
 0x285   : > { %1186 = vst [vmem:[%s2198_s16 + $0x18] sm:$0xff] %v1120_v8  ;;  %v1115_v30 = vadd.f32 %v1330_v24, %v1114_v29 }
 0x286   : > { %v1625_v9 = vpop.f32.mrf.mxu1 }
 0x287   : > { %1185 = vst [vmem:[%s2198_s16 + $0x10] sm:$0xff] %v1115_v30  ;;  %v1130_v31 = vadd.f32 %v1625_v9, %v1330_v24 }
 0x288   : > { %v1124_v32 = vpop.f32.mrf.mxu1 }
 0x289   : > { %1188 = vst [vmem:[%s2198_s16 + $0x28] sm:$0xff] %v1130_v31  ;;  %v1125_v10 = vadd.f32 %v1330_v24, %v1124_v32 }
 0x28a   : > { %v1628_v11 = vpop.f32.mrf.mxu1 }
 0x28b   : > { %1187 = vst [vmem:[%s2198_s16 + $0x20] sm:$0xff] %v1125_v10  ;;  %v1140_v21 = vadd.f32 %v1628_v11, %v1330_v24 }
 0x28c   : > { %v1134_v33 = vpop.f32.mrf.mxu1 }
 0x28d   : > { %1190 = vst [vmem:[%s2198_s16 + $0x38] sm:$0xff] %v1140_v21  ;;  %v1135_v34 = vadd.f32 %v1330_v24, %v1134_v33 }
 0x28e   : > { %v1631_v35 = vpop.f32.mrf.mxu1 }
 0x28f   : > { %1189 = vst [vmem:[%s2198_s16 + $0x30] sm:$0xff] %v1135_v34  ;;  %v1150_v36 = vadd.f32 %v1631_v35, %v1330_v24 }
 0x290   : > { %v1144_v37 = vpop.f32.mrf.mxu1 }
 0x291   : > { %1192 = vst [vmem:[%s2198_s16 + $0x48] sm:$0xff] %v1150_v36  ;;  %v1145_v38 = vadd.f32 %v1330_v24, %v1144_v37 }
 0x292   : > { %v1634_v39 = vpop.f32.mrf.mxu1 }
 0x293   : > { %1191 = vst [vmem:[%s2198_s16 + $0x40] sm:$0xff] %v1145_v38  ;;  %v1160_v40 = vadd.f32 %v1634_v39, %v1330_v24 }
 0x294   : > { %v1154_v41 = vpop.f32.mrf.mxu1 }
 0x295   : > { %1194 = vst [vmem:[%s2198_s16 + $0x58] sm:$0xff] %v1160_v40  ;;  %v1155_v42 = vadd.f32 %v1330_v24, %v1154_v41 }
 0x296   : > { %v1637_v43 = vpop.f32.mrf.mxu1 }
 0x297   : > { %1193 = vst [vmem:[%s2198_s16 + $0x50] sm:$0xff] %v1155_v42  ;;  %v1170_v44 = vadd.f32 %v1637_v43, %v1330_v24 }
 0x298   : > { %v1164_v45 = vpop.f32.mrf.mxu1 }
 0x299   : > { %1196 = vst [vmem:[%s2198_s16 + $0x68] sm:$0xff] %v1170_v44  ;;  %v1165_v46 = vadd.f32 %v1330_v24, %v1164_v45 }
 0x29a   : > { %v1640_v47 = vpop.f32.mrf.mxu1 }
 0x29b   : > { %1195 = vst [vmem:[%s2198_s16 + $0x60] sm:$0xff] %v1165_v46  ;;  %v1180_v48 = vadd.f32 %v1640_v47, %v1330_v24 }
 0x29c   : > { %v1174_v49 = vpop.f32.mrf.mxu1 }
 0x29d   : > { %1198 = vst [vmem:[%s2198_s16 + $0x78] sm:$0xff] %v1180_v48  ;;  %v1175_v50 = vadd.f32 %v1330_v24, %v1174_v49 }
 0x29f   : > { %1197 = vst [vmem:[%s2198_s16 + $0x70] sm:$0xff] %v1175_v50 }
 0x2a0   : > { %1727 = shalt.err (!%p1724_p3)
}
 0x2a1   : > { %s1728_s28 = scalar_lea.hbm %s2219_s26, 2048  ;;  %s1732_s25 = scalar_lea.hbm %s2276_s9, 4096 }
 0x2a2   : > { %p1729_p4 = scmp.ne.s32.totalorder %s2219_s26, %s1728_s28  ;;  %p1733_p9 = scmp.lt.s32.totalorder %s2219_s26, %s2276_s9 }
 0x2a3   : > { %p1734_p10 = scmp.lt.s32.totalorder %s1732_s25, %s1728_s28 }
 0x2a4   : > { %p1730_p7 = pnand %p1729_p4, %p1867_p5 }
 0x2a5   : > { %p1735_p11 = por %p1734_p10, %p1733_p9 }
 0x2a6   : > { %p1731_p8 = pneg %p1730_p7 }
 0x2a8   : > { %p1736_p12 = pnand %p1735_p11, %p1731_p8 }
 0x2aa   : > { %1739 = shalt.err (!%p1736_p12)
}
 0x2ab   : > { %s1777_s17 = smov 128   ;;  %s1778_s27 = smov 8  }
 0x2ac   : > { %1673 = dma.vmem_to_hbm [thread:$0]  (%p1867_p5), %s2221_s21, 2048, %s2219_s26, %s2227_s13, %s1777_s17, %s1777_s17, %s1778_s27  }
 0x2ad PF: > { %p1679_p13 = scmp.ge.s32.totalorder %s1774_s12, 2  ;;  %s1228_s24 = sand.u32 1, %s1762_s30  }
 0x2ae   : > { %s1229_s29 = scalar_lea.sflag [#allocation3], %s1228_s24 }
 0x2af   : > { %p1676_p0 = pnand %p1679_p13, %p1871_p6 }
 0x2b1   : > { %p1677_p1 = pneg %p1676_p0 }
 0x2b3   : > { %1757 = dma.done.wait (%p1677_p1), %s1229_s29, 2048  }
 0x2b4   : > { %1759 = vsyncadd (%p1677_p1), %s1229_s29, 4294965248  ;;  %p19_p2 = scmp.ge.s32.totalorder %s1854_s15, 4   ;;  %s2279_s30 = smov %s1766_s10 }
 0x2b5   : > { %s2280_s10 = smov %s1770_s11  ;;  %s2281_s11 = smov %s1865_s18 }
 0x2b6   : > { %s2282_s12 = smov %s1854_s15  ;;  %21 = sbr.rel (!%p19_p2) target bundleno = 3 (0x3), region = 94 }
 0x2bb   :  { %1234 = vsyncpa [#allocation3], 1 }
 0x2bc   :  { %1236 = vsyncpa [#allocation3 + $0x1], 1 }

</bundles_post_ra>
